<compile_context>
chip_gen: v5e
topology: v5e:2x2
jax: 0.10.0
libtpu: 0.0.40
codegen_flags: <defaults>
</compile_context>

<pallas_src>
import functools

import jax
import jax.numpy as jnp
from jax.experimental import pallas as pl
from jax.experimental.pallas import tpu as pltpu

# ---- module constants (mirroring MixedEnvModel.__init__) -------------------
ROBOT_STATE_DIMS = 7
HUMAN_STATE_DIMS = 7
SUCCESS_REW = 1.0
COLLISION_PEN = -0.25
DISCOMFORT_DIST = 0.2
DISCOMFORT_PENALTY_FACTOR = 0.5
APPROACHING_REW = 0.1
# NOTE: elapsed_time_penalty / kinematics exist on the module but are never
# used in forward(), so they do not appear here.


def _mixed_env_kernel(xT_ref, w1_ref, b1_ref, w2_ref, b2_ref, w3_ref, b3_ref,
                      out_ref, *, state_dim):
    """One batch tile.  Features live on sublanes, batch lives on lanes.

    xT_ref : (in_dim, TB)   transposed inputs (compute dtype, e.g. bf16)
    w*_ref : (out, in)      nn.Linear weight layout (compute dtype)
    b*_ref : (out, 1)       biases (f32)
    out_ref: (OUT_PAD, TB)  rows [0, state_dim) = new_states, row state_dim = reward
    """
    cd = w1_ref.dtype
    x = xT_ref[...]                                       # (in_dim, TB)

    # ---- state_net: Linear -> ReLU x3.  MXU accumulates in f32; activations
    # are cast back to the compute dtype between layers. -----------------------
    h = jnp.dot(w1_ref[...], x, preferred_element_type=jnp.float32)
    h = jnp.maximum(h + b1_ref[...], 0.0).astype(cd)
    h = jnp.dot(w2_ref[...], h, preferred_element_type=jnp.float32)
    h = jnp.maximum(h + b2_ref[...], 0.0).astype(cd)
    nsp = jnp.dot(w3_ref[...], h, preferred_element_type=jnp.float32)
    nsp = jnp.maximum(nsp + b3_ref[...], 0.0)             # (OUT_PAD, TB) f32
    # rows >= state_dim come from zero-padded w3/b3 -> relu(0) == 0.

    # ---- calculate_rewards: every feature pick is a static sublane-row slice
    # (lane-dense (1, TB) rows); all reward math stays in f32 on the VPU. ------
    x0 = x[0:1, :].astype(jnp.float32)
    x1 = x[1:2, :].astype(jnp.float32)
    old_dist = jnp.sqrt(x0 * x0 + x1 * x1)                # (1, TB)
    new_dist = jnp.sqrt(nsp[0:1, :] ** 2 + nsp[1:2, :] ** 2)
    radius = nsp[4:5, :]

    reward = -(new_dist - old_dist) * APPROACHING_REW

    # sequential torch.where scan over humans == running min / running or
    # (if there are zero humans dmin stays +inf, matching the PyTorch module)
    dmin = jnp.full_like(radius, jnp.inf)
    collision = jnp.zeros(radius.shape, dtype=jnp.bool_)
    for j in range(ROBOT_STATE_DIMS, state_dim, HUMAN_STATE_DIMS):
        d = nsp[j + 5:j + 6, :]
        r = nsp[j + 6:j + 7, :]
        dmin = jnp.minimum(dmin, d)
        collision = jnp.logical_or(collision, d <= r)

    reward = reward + (dmin - 2.0 * radius - DISCOMFORT_DIST) * DISCOMFORT_PENALTY_FACTOR
    reward = jnp.where(new_dist < radius, SUCCESS_REW, reward)   # reaching goal
    reward = jnp.where(collision, COLLISION_PEN, reward)         # collision wins

    # Merged lane-dense output slab: new_states rows, reward in row state_dim
    # (that row is 0 from the zero-padded layer-3 weights, overwrite it).
    out_ref[...] = nsp.astype(out_ref.dtype)
    out_ref[state_dim:state_dim + 1, :] = reward.astype(out_ref.dtype)


def _round_up(v, m):
    return ((v + m - 1) // m) * m


def mixed_env_model_forward(inputs, params, *, state_dim, num_actions,
                            batch_block=4096, compute_dtype=jnp.bfloat16):
    """Pallas implementation of MixedEnvModel.forward.

    inputs : (B, state_dim + num_actions) float32
    params : dict with w1,b1,w2,b2,w3,b3 in nn.Linear layout
             (w*: (out_features, in_features), b*: (out_features,)).
    Returns (new_states (B, state_dim) f32, rewards (B, 1) f32).
    """
    B, in_dim = inputs.shape
    assert in_dim == state_dim + num_actions

    # output slab rows: state_dim new_state rows + 1 reward row, 8-aligned
    out_pad = _round_up(state_dim + 1, 8)

    cd = compute_dtype
    xT = inputs.T.astype(cd)                                       # (in_dim, B)
    w1 = params["w1"].astype(cd)
    w2 = params["w2"].astype(cd)
    w3 = jnp.pad(params["w3"], ((0, out_pad - state_dim), (0, 0))).astype(cd)
    b1 = params["b1"].reshape(-1, 1).astype(jnp.float32)
    b2 = params["b2"].reshape(-1, 1).astype(jnp.float32)
    b3 = jnp.pad(params["b3"], (0, out_pad - state_dim)).reshape(-1, 1).astype(jnp.float32)

    # Batch tile: one block for small batches; otherwise 128-lane-aligned
    # tiles with at least 2 grid steps (keeps both v7x TensorCores busy).
    if B <= 128:
        tb = B
    else:
        bb = _round_up(batch_block, 128)
        tb = min(bb, max(128, _round_up(pl.cdiv(B, 2), 128)))
    grid = (pl.cdiv(B, tb),)

    kernel = functools.partial(_mixed_env_kernel, state_dim=state_dim)

    itemsize = jnp.dtype(cd).itemsize
    flops = 2 * B * (2 * in_dim * in_dim + in_dim * out_pad)
    bytes_accessed = (itemsize * (B * in_dim + 2 * in_dim * in_dim + out_pad * in_dim)
                      + 4 * (B * out_pad + 2 * in_dim + out_pad))

    out = pl.pallas_call(
        kernel,
        out_shape=jax.ShapeDtypeStruct((out_pad, B), jnp.float32),
        grid_spec=pltpu.PrefetchScalarGridSpec(
            num_scalar_prefetch=0,
            grid=grid,
            in_specs=[
                pl.BlockSpec((in_dim, tb), lambda i: (0, i)),   # x^T batch tile
                pl.BlockSpec(w1.shape, lambda i: (0, 0)),       # resident weights
                pl.BlockSpec(b1.shape, lambda i: (0, 0)),
                pl.BlockSpec(w2.shape, lambda i: (0, 0)),
                pl.BlockSpec(b2.shape, lambda i: (0, 0)),
                pl.BlockSpec(w3.shape, lambda i: (0, 0)),
                pl.BlockSpec(b3.shape, lambda i: (0, 0)),
            ],
            out_specs=pl.BlockSpec((out_pad, tb), lambda i: (0, i)),
        ),
        compiler_params=pltpu.CompilerParams(
            dimension_semantics=("parallel",)),
        cost_estimate=pl.CostEstimate(
            flops=flops, transcendentals=2 * B, bytes_accessed=bytes_accessed),
    )(xT, w1, b1, w2, b2, w3, b3)

    new_states = out[:state_dim, :].T                  # (B, state_dim)
    rewards = out[state_dim:state_dim + 1, :].T        # (B, 1)
    return new_states, rewards


def _reference_forward(inputs, params, *, state_dim):
    """Pure-JAX reference mirroring the PyTorch module, for verification."""
    h1 = jnp.maximum(inputs @ params["w1"].T + params["b1"], 0.0)
    h2 = jnp.maximum(h1 @ params["w2"].T + params["b2"], 0.0)
    ns = jnp.maximum(h2 @ params["w3"].T + params["b3"], 0.0)

    old_d = jnp.sqrt(inputs[:, 0] ** 2 + inputs[:, 1] ** 2)
    new_d = jnp.sqrt(ns[:, 0] ** 2 + ns[:, 1] ** 2)
    reaching = new_d < ns[:, 4]
    reward = -(new_d - old_d) * APPROACHING_REW
    dmin = jnp.full((inputs.shape[0],), jnp.inf)
    collision = jnp.zeros((inputs.shape[0],), dtype=bool)
    for j in range(ROBOT_STATE_DIMS, state_dim, HUMAN_STATE_DIMS):
        dmin = jnp.where(ns[:, j + 5] <= dmin, ns[:, j + 5], dmin)
        collision = jnp.logical_or(collision, ns[:, j + 5] <= ns[:, j + 6])
    reward = reward + (dmin - 2 * ns[:, 4] - DISCOMFORT_DIST) * DISCOMFORT_PENALTY_FACTOR
    reward = jnp.where(reaching, SUCCESS_REW, reward)
    reward = jnp.where(collision, COLLISION_PEN, reward)
    return ns, reward[:, None]


if __name__ == "__main__":
    # robot (7) + 2 humans (2*7) = 21 state dims, 5 discrete actions, batch 16
    STATE_DIM = ROBOT_STATE_DIMS + 2 * HUMAN_STATE_DIMS   # 21
    NUM_ACTIONS = 5
    BATCH = 16
    IN_DIM = STATE_DIM + NUM_ACTIONS                       # 26

    key = jax.random.PRNGKey(0)
    k_in, k1, k2, k3, kb1, kb2, kb3 = jax.random.split(key, 7)

    inputs = jax.random.normal(k_in, (BATCH, IN_DIM), dtype=jnp.float32)

    # deterministic parameter init in nn.Linear layout: W (out, in), b (out,)
    scale = 1.0 / jnp.sqrt(jnp.float32(IN_DIM))
    params = {
        "w1": jax.random.uniform(k1, (IN_DIM, IN_DIM), jnp.float32, -scale, scale),
        "b1": jax.random.uniform(kb1, (IN_DIM,), jnp.float32, -scale, scale),
        "w2": jax.random.uniform(k2, (IN_DIM, IN_DIM), jnp.float32, -scale, scale),
        "b2": jax.random.uniform(kb2, (IN_DIM,), jnp.float32, -scale, scale),
        "w3": jax.random.uniform(k3, (STATE_DIM, IN_DIM), jnp.float32, -scale, scale),
        "b3": jax.random.uniform(kb3, (STATE_DIM,), jnp.float32, -scale, scale),
    }

    ref_ns, ref_rew = _reference_forward(inputs, params, state_dim=STATE_DIM)

    # ---- f32 path: tight correctness check ---------------------------------
    ns32, rew32 = mixed_env_model_forward(
        inputs, params, state_dim=STATE_DIM, num_actions=NUM_ACTIONS,
        compute_dtype=jnp.float32)
    jax.block_until_ready((ns32, rew32))
    assert ns32.shape == (BATCH, STATE_DIM) and rew32.shape == (BATCH, 1)
    assert jnp.allclose(ns32, ref_ns, atol=1e-5, rtol=1e-5), \
        float(jnp.max(jnp.abs(ns32 - ref_ns)))
    assert jnp.allclose(rew32, ref_rew, atol=1e-5, rtol=1e-5), \
        float(jnp.max(jnp.abs(rew32 - ref_rew)))

    # ---- bf16 path (default perf config): loose sanity check ----------------
    nsbf, rewbf = mixed_env_model_forward(
        inputs, params, state_dim=STATE_DIM, num_actions=NUM_ACTIONS)
    jax.block_until_ready((nsbf, rewbf))
    assert nsbf.shape == (BATCH, STATE_DIM) and rewbf.shape == (BATCH, 1)
    assert float(jnp.max(jnp.abs(nsbf.astype(jnp.float32) - ref_ns))) < 0.25
    assert bool(jnp.all(jnp.isfinite(rewbf)))

    print("KERNEL_OK")
</pallas_src>

<mosaic_0001>
module attributes {stable_mosaic.version = 11 : i64} {
  func.func @_mixed_env_kernel(%arg0: i32, %arg1: memref<26x16xf32, #tpu.memory_space<vmem>>, %arg2: memref<26x26xf32, #tpu.memory_space<vmem>>, %arg3: memref<26x1xf32, #tpu.memory_space<vmem>>, %arg4: memref<26x26xf32, #tpu.memory_space<vmem>>, %arg5: memref<26x1xf32, #tpu.memory_space<vmem>>, %arg6: memref<24x26xf32, #tpu.memory_space<vmem>>, %arg7: memref<24x1xf32, #tpu.memory_space<vmem>>, %arg8: memref<24x16xf32, #tpu.memory_space<vmem>>) attributes {dimension_semantics = [#tpu.dimension_semantics<parallel>], iteration_bounds = array<i64: 1>, scalar_prefetch = 0 : i64, scratch_operands = 0 : i64, tpu.core_type = #tpu.core_type<tc>, window_params = [{transform_indices = @transform_0, window_bounds = array<i64: 26, 16>}, {pipeline_mode = #tpu.pipeline_mode<synchronous>, transform_indices = @transform_1, window_bounds = array<i64: 26, 26>}, {pipeline_mode = #tpu.pipeline_mode<synchronous>, transform_indices = @transform_2, window_bounds = array<i64: 26, 1>}, {pipeline_mode = #tpu.pipeline_mode<synchronous>, transform_indices = @transform_3, window_bounds = array<i64: 26, 26>}, {pipeline_mode = #tpu.pipeline_mode<synchronous>, transform_indices = @transform_4, window_bounds = array<i64: 26, 1>}, {pipeline_mode = #tpu.pipeline_mode<synchronous>, transform_indices = @transform_5, window_bounds = array<i64: 24, 26>}, {pipeline_mode = #tpu.pipeline_mode<synchronous>, transform_indices = @transform_6, window_bounds = array<i64: 24, 1>}, {transform_indices = @transform_7, window_bounds = array<i64: 24, 16>}]} {
    %c0 = arith.constant 0 : index
    %c0_0 = arith.constant 0 : index
    %0 = vector.load %arg1[%c0, %c0_0] : memref<26x16xf32, #tpu.memory_space<vmem>>, vector<26x16xf32>
    %c0_1 = arith.constant 0 : index
    %c0_2 = arith.constant 0 : index
    %1 = vector.load %arg2[%c0_1, %c0_2] : memref<26x26xf32, #tpu.memory_space<vmem>>, vector<26x26xf32>
    %cst = arith.constant dense<0.000000e+00> : vector<26x16xf32>
    %2 = tpu.matmul %1, %0, %cst {dimension_numbers = #tpu.dot_dimension_numbers<[1], [0], [0], [1], [0, 0, 1, 1], [], []>} : vector<26x26xf32>, vector<26x16xf32>, vector<26x16xf32> -> vector<26x16xf32>
    %c0_3 = arith.constant 0 : index
    %c0_4 = arith.constant 0 : index
    %3 = vector.load %arg3[%c0_3, %c0_4] : memref<26x1xf32, #tpu.memory_space<vmem>>, vector<26x1xf32>
    %4 = vector.broadcast %3 : vector<26x1xf32> to vector<26x16xf32>
    %5 = arith.addf %2, %4 : vector<26x16xf32>
    %cst_5 = arith.constant 0.000000e+00 : f32
    %6 = vector.broadcast %cst_5 : f32 to vector<26x16xf32>
    %7 = arith.maximumf %5, %6 : vector<26x16xf32>
    %c0_6 = arith.constant 0 : index
    %c0_7 = arith.constant 0 : index
    %8 = vector.load %arg4[%c0_6, %c0_7] : memref<26x26xf32, #tpu.memory_space<vmem>>, vector<26x26xf32>
    %cst_8 = arith.constant dense<0.000000e+00> : vector<26x16xf32>
    %9 = tpu.matmul %8, %7, %cst_8 {dimension_numbers = #tpu.dot_dimension_numbers<[1], [0], [0], [1], [0, 0, 1, 1], [], []>} : vector<26x26xf32>, vector<26x16xf32>, vector<26x16xf32> -> vector<26x16xf32>
    %c0_9 = arith.constant 0 : index
    %c0_10 = arith.constant 0 : index
    %10 = vector.load %arg5[%c0_9, %c0_10] : memref<26x1xf32, #tpu.memory_space<vmem>>, vector<26x1xf32>
    %11 = vector.broadcast %10 : vector<26x1xf32> to vector<26x16xf32>
    %12 = arith.addf %9, %11 : vector<26x16xf32>
    %cst_11 = arith.constant 0.000000e+00 : f32
    %13 = vector.broadcast %cst_11 : f32 to vector<26x16xf32>
    %14 = arith.maximumf %12, %13 : vector<26x16xf32>
    %c0_12 = arith.constant 0 : index
    %c0_13 = arith.constant 0 : index
    %15 = vector.load %arg6[%c0_12, %c0_13] : memref<24x26xf32, #tpu.memory_space<vmem>>, vector<24x26xf32>
    %cst_14 = arith.constant dense<0.000000e+00> : vector<24x16xf32>
    %16 = tpu.matmul %15, %14, %cst_14 {dimension_numbers = #tpu.dot_dimension_numbers<[1], [0], [0], [1], [0, 0, 1, 1], [], []>} : vector<24x26xf32>, vector<26x16xf32>, vector<24x16xf32> -> vector<24x16xf32>
    %c0_15 = arith.constant 0 : index
    %c0_16 = arith.constant 0 : index
    %17 = vector.load %arg7[%c0_15, %c0_16] : memref<24x1xf32, #tpu.memory_space<vmem>>, vector<24x1xf32>
    %18 = vector.broadcast %17 : vector<24x1xf32> to vector<24x16xf32>
    %19 = arith.addf %16, %18 : vector<24x16xf32>
    %cst_17 = arith.constant 0.000000e+00 : f32
    %20 = vector.broadcast %cst_17 : f32 to vector<24x16xf32>
    %21 = arith.maximumf %19, %20 : vector<24x16xf32>
    %22 = vector.extract_strided_slice %0 {offsets = [0, 0], sizes = [1, 16], strides = [1, 1]} : vector<26x16xf32> to vector<1x16xf32>
    %23 = vector.extract_strided_slice %0 {offsets = [1, 0], sizes = [1, 16], strides = [1, 1]} : vector<26x16xf32> to vector<1x16xf32>
    %24 = arith.mulf %22, %22 : vector<1x16xf32>
    %25 = arith.mulf %23, %23 : vector<1x16xf32>
    %26 = arith.addf %24, %25 : vector<1x16xf32>
    %27 = math.sqrt %26 : vector<1x16xf32>
    %28 = vector.extract_strided_slice %21 {offsets = [0, 0], sizes = [1, 16], strides = [1, 1]} : vector<24x16xf32> to vector<1x16xf32>
    %29 = arith.mulf %28, %28 : vector<1x16xf32>
    %30 = vector.extract_strided_slice %21 {offsets = [1, 0], sizes = [1, 16], strides = [1, 1]} : vector<24x16xf32> to vector<1x16xf32>
    %31 = arith.mulf %30, %30 : vector<1x16xf32>
    %32 = arith.addf %29, %31 : vector<1x16xf32>
    %33 = math.sqrt %32 : vector<1x16xf32>
    %34 = vector.extract_strided_slice %21 {offsets = [4, 0], sizes = [1, 16], strides = [1, 1]} : vector<24x16xf32> to vector<1x16xf32>
    %35 = arith.subf %33, %27 : vector<1x16xf32>
    %cst_18 = arith.constant 0.000000e+00 : f32
    %36 = vector.broadcast %cst_18 : f32 to vector<1x16xf32>
    %37 = arith.subf %36, %35 : vector<1x16xf32>
    %cst_19 = arith.constant 1.000000e-01 : f32
    %38 = vector.broadcast %cst_19 : f32 to vector<1x16xf32>
    %39 = arith.mulf %37, %38 : vector<1x16xf32>
    %cst_20 = arith.constant 0x7F800000 : f32
    %40 = vector.broadcast %cst_20 : f32 to vector<1x16xf32>
    %false = arith.constant false
    %41 = vector.broadcast %false : i1 to vector<1x16xi1>
    %42 = vector.extract_strided_slice %21 {offsets = [12, 0], sizes = [1, 16], strides = [1, 1]} : vector<24x16xf32> to vector<1x16xf32>
    %43 = vector.extract_strided_slice %21 {offsets = [13, 0], sizes = [1, 16], strides = [1, 1]} : vector<24x16xf32> to vector<1x16xf32>
    %44 = arith.minimumf %40, %42 : vector<1x16xf32>
    %45 = arith.cmpf ole, %42, %43 : vector<1x16xf32>
    %46 = arith.ori %41, %45 : vector<1x16xi1>
    %47 = vector.extract_strided_slice %21 {offsets = [19, 0], sizes = [1, 16], strides = [1, 1]} : vector<24x16xf32> to vector<1x16xf32>
    %48 = vector.extract_strided_slice %21 {offsets = [20, 0], sizes = [1, 16], strides = [1, 1]} : vector<24x16xf32> to vector<1x16xf32>
    %49 = arith.minimumf %44, %47 : vector<1x16xf32>
    %50 = arith.cmpf ole, %47, %48 : vector<1x16xf32>
    %51 = arith.ori %46, %50 : vector<1x16xi1>
    %cst_21 = arith.constant 2.000000e+00 : f32
    %52 = vector.broadcast %cst_21 : f32 to vector<1x16xf32>
    %53 = arith.mulf %52, %34 : vector<1x16xf32>
    %54 = arith.subf %49, %53 : vector<1x16xf32>
    %cst_22 = arith.constant 2.000000e-01 : f32
    %55 = vector.broadcast %cst_22 : f32 to vector<1x16xf32>
    %56 = arith.subf %54, %55 : vector<1x16xf32>
    %cst_23 = arith.constant 5.000000e-01 : f32
    %57 = vector.broadcast %cst_23 : f32 to vector<1x16xf32>
    %58 = arith.mulf %56, %57 : vector<1x16xf32>
    %59 = arith.addf %39, %58 : vector<1x16xf32>
    %60 = arith.cmpf olt, %33, %34 : vector<1x16xf32>
    %cst_24 = arith.constant 1.000000e+00 : f32
    %61 = vector.broadcast %cst_24 : f32 to vector<1x16xf32>
    %62 = arith.select %60, %61, %59 : vector<1x16xi1>, vector<1x16xf32>
    %cst_25 = arith.constant -2.500000e-01 : f32
    %63 = vector.broadcast %cst_25 : f32 to vector<1x16xf32>
    %64 = arith.select %51, %63, %62 : vector<1x16xi1>, vector<1x16xf32>
    %c0_26 = arith.constant 0 : index
    %c0_27 = arith.constant 0 : index
    %65 = vector.load %arg8[%c0_26, %c0_27] : memref<24x16xf32, #tpu.memory_space<vmem>>, vector<24x16xf32>
    tpu.vector_store %arg8[%c0_26, %c0_27], %21 {strides = array<i32>} : memref<24x16xf32, #tpu.memory_space<vmem>>, vector<24x16xf32>,
    %c21 = arith.constant 21 : index
    %c0_28 = arith.constant 0 : index
    %66 = vector.load %arg8[%c21, %c0_28] : memref<24x16xf32, #tpu.memory_space<vmem>>, vector<1x16xf32>
    tpu.vector_store %arg8[%c21, %c0_28], %64 {strides = array<i32>} : memref<24x16xf32, #tpu.memory_space<vmem>>, vector<1x16xf32>,
    return
  }
  func.func @transform_0(%arg0: i32) -> (i32, i32) {
    %c0_i32 = arith.constant 0 : i32
    %c0_i32_0 = arith.constant 0 : i32
    return %c0_i32, %arg0 : i32, i32
  }
  func.func @transform_1(%arg0: i32) -> (i32, i32) {
    %c0_i32 = arith.constant 0 : i32
    %c0_i32_0 = arith.constant 0 : i32
    %c0_i32_1 = arith.constant 0 : i32
    return %c0_i32, %c0_i32_0 : i32, i32
  }
  func.func @transform_2(%arg0: i32) -> (i32, i32) {
    %c0_i32 = arith.constant 0 : i32
    %c0_i32_0 = arith.constant 0 : i32
    %c0_i32_1 = arith.constant 0 : i32
    return %c0_i32, %c0_i32_0 : i32, i32
  }
  func.func @transform_3(%arg0: i32) -> (i32, i32) {
    %c0_i32 = arith.constant 0 : i32
    %c0_i32_0 = arith.constant 0 : i32
    %c0_i32_1 = arith.constant 0 : i32
    return %c0_i32, %c0_i32_0 : i32, i32
  }
  func.func @transform_4(%arg0: i32) -> (i32, i32) {
    %c0_i32 = arith.constant 0 : i32
    %c0_i32_0 = arith.constant 0 : i32
    %c0_i32_1 = arith.constant 0 : i32
    return %c0_i32, %c0_i32_0 : i32, i32
  }
  func.func @transform_5(%arg0: i32) -> (i32, i32) {
    %c0_i32 = arith.constant 0 : i32
    %c0_i32_0 = arith.constant 0 : i32
    %c0_i32_1 = arith.constant 0 : i32
    return %c0_i32, %c0_i32_0 : i32, i32
  }
  func.func @transform_6(%arg0: i32) -> (i32, i32) {
    %c0_i32 = arith.constant 0 : i32
    %c0_i32_0 = arith.constant 0 : i32
    %c0_i32_1 = arith.constant 0 : i32
    return %c0_i32, %c0_i32_0 : i32, i32
  }
  func.func @transform_7(%arg0: i32) -> (i32, i32) {
    %c0_i32 = arith.constant 0 : i32
    %c0_i32_0 = arith.constant 0 : i32
    return %c0_i32, %arg0 : i32, i32
  }
}

</mosaic_0001>

<bundles_post_ra>
// kernel: tpu_custom_call.1
= control target key start
LH: loop header
LB: loop body
LE: loop exit
PB: predicated region body
PF: predicated region fallthrough
CT: control target
= control target key end

     0   :  { %vm71_vm0 = vcmask 1041408   ;;  %v356_v2 = vmov 0   ;;  %vm58_vm1 = vcmask 211968   ;;  %vm315_vm2 = vcmask 130048   ;;  %s516_s0 = inlined_call_operand.vmem [shape: f32[26,16], index: 0, kind: input, shape index: {}]   ;;  %s517_s2 = inlined_call_operand.vmem [shape: f32[26,1], index: 2, kind: input, shape index: {}]   ;;  %s518_s1 = inlined_call_operand.vmem [shape: f32[26,26], index: 1, kind: input, shape index: {}]   ;;  %s519_s4 = inlined_call_operand.vmem [shape: f32[26,1], index: 4, kind: input, shape index: {}]   ;;  %s520_s6 = inlined_call_operand.vmem [shape: f32[24,1], index: 6, kind: input, shape index: {}]   ;;  %s521_s3 = inlined_call_operand.vmem [shape: f32[26,26], index: 3, kind: input, shape index: {}]   ;;  %s522_s5 = inlined_call_operand.vmem [shape: f32[24,26], index: 5, kind: input, shape index: {}]   ;;  %s523_s7 = inlined_call_operand.vmem [shape: f32[24,16], index: 7, kind: output, shape index: {}]  }
   0x1   :  { %v29_v0 = vld [vmem:[%s516_s0 + $0x18] sm:$0x3]  ;;  %v28_v1 = vld [vmem:[%s516_s0 + $0x10] sm:$0xff]  ;;  %349 = vset.pattern.permute.xlu0 %v356_v2  ;;  %350 = vset.pattern.permute.xlu1 %v356_v2  ;;  %v27_v4 = vld [vmem:[%s516_s0 + $0x8] sm:$0xff]  ;;  %vm319_vm11 = vcmask 126980  }
   0x2   :  { %340 = vmatpush.msk.msra.mxu3 %vm71_vm0, %v29_v0  ;;  %v37_v3 = vld [vmem:[%s517_s2 + $0x18] sm:$0x3]  ;;  %325 = vmatpush.msk.msra.mxu0 %vm71_vm0, %v29_v0  ;;  %v35_v5 = vld [vmem:[%s517_s2 + $0x8] sm:$0xff]  ;;  %v420_v6 = vld [vmem:[%s516_s0] sm:$0xff] }
   0x3   :  { %55 = vperm.xlu0 %349, %v37_v3   ;;  %351 = vset.pattern.permute.xlu2 %v356_v2  ;;  %v31_v7 = vld [vmem:[%s518_s1 + $0x8] sm:$0xff]  ;;  %v30_v8 = vld [vmem:[%s518_s1] sm:$0xff]  ;;  %v36_v9 = vld [vmem:[%s517_s2 + $0x10] sm:$0xff]  ;;  %v246_v59 = vmul.f32 %v420_v6, %v420_v6 }
   0x4   :  { %341 = vmatpush.msra.mxu3 %v28_v1  ;;  %45 = vperm.xlu1 %350, %v35_v5   ;;  %v34_v10 = vld [vmem:[%s517_s2] sm:$0xff]  ;;  %v32_v11 = vld [vmem:[%s518_s1 + $0x10] sm:$0xff]  ;;  %v113_v12 = vld [vmem:[%s519_s4 + $0x8] sm:$0xff] }
   0x5   :  { %88 = vmatpush.msra.mxu0 %v28_v1  ;;  %v112_v13 = vld [vmem:[%s519_s4] sm:$0xff]  ;;  %v33_v14 = vld [vmem:[%s518_s1 + $0x18] sm:$0x3]  ;;  %v189_v15 = vld [vmem:[%s520_s6 + $0x10] sm:$0xff]  ;;  %v248_v60 = vrot.slane %v246_v59, 1 }
   0x6   :  { %342 = vmatpush.msra.mxu3 %v27_v4  ;;  %v188_v16 = vld [vmem:[%s520_s6 + $0x8] sm:$0xff]  ;;  %v115_v21 = vld [vmem:[%s519_s4 + $0x18] sm:$0x3]  ;;  %v114_v29 = vld [vmem:[%s519_s4 + $0x10] sm:$0xff] }
   0x7   :  { %89 = vmatpush.msra.mxu0 %v27_v4  ;;  %133 = vperm.xlu2 %351, %v115_v21   ;;  %v108_v35 = vld [vmem:[%s521_s3] sm:$0xff]  ;;  %v109_v36 = vld [vmem:[%s521_s3 + $0x8] sm:$0xff]  ;;  %v110_v38 = vld [vmem:[%s521_s3 + $0x10] sm:$0xff]  ;;  %v250_v61 = vadd.f32 %v248_v60, %v246_v59 }
   0x8   :  { %343 = vmatpush.msra.mxu3 %v420_v6  ;;  %v187_v37 = vld [vmem:[%s520_s6] sm:$0xff]  ;;  %v111_v39 = vld [vmem:[%s521_s3 + $0x18] sm:$0x3]  ;;  %v185_v57 = vld [vmem:[%s522_s5 + $0x8] sm:$0xff] }
   0x9   :  { %327 = vmatmul.msk.f32.vlgmr.msra.gmra.mxu3 %vm58_vm1, %v31_v7  ;;  %90 = vmatpush.msra.mxu0 %v420_v6  ;;  %v184_v56 = vld [vmem:[%s522_s5] sm:$0xff]  ;;  %v186_v58 = vld [vmem:[%s522_s5 + $0x10] sm:$0xff]  ;;  %352 = vrsqrt.f32 %v250_v61  ;;  %vm258_vm3 = vcmp.eq.f32.partialorder %v250_v61, inf  ;;  %vm260_vm4 = vcmp.eq.f32.partialorder %v250_v61, 0.0 }
   0xa   :  { %326 = vmatmul.msk.f32.vlgmr.msra.gmra.mxu0 %vm58_vm1, %v30_v8 }
   0xb   :  { %50 = vperm.xlu0 %349, %v36_v9  }
   0xc   :  { %40 = vperm.xlu1 %350, %v34_v10  }
   0xf   :  { %128 = vperm.xlu2 %351, %v114_v29   ;;  %v353_v62 = vpop.eup %352  ;;  %v261_v29 = vand.u32 2147483648, %v250_v61 }
  0x10   :  { %v252_v3 = vmul.f32 %v353_v62, %v250_v61 }
  0x11   :  { %328 = vmatmul.msk.f32.gmra.mxu3 %vm58_vm1, %v32_v11 }
  0x12   :  { %v253_v7 = vmul.f32 %v353_v62, %v252_v3 }
  0x13   :  { %123 = vperm.xlu0 %349, %v113_v12  }
  0x14   :  { %118 = vperm.xlu1 %350, %v112_v13   ;;  %v254_v12 = vmul.f32 0.5, %v253_v7 }
  0x17   :  { %192 = vperm.xlu2 %351, %v187_v37  }
  0x19   :  { %329 = vmatmul.msk.f32.gmra.mxu3 %vm58_vm1, %v33_v14  ;;  %v255_v14 = vsub.f32 1.5, %v254_v12 }
  0x1b   :  { %202 = vperm.xlu0 %349, %v189_v15  }
  0x1c   :  { %197 = vperm.xlu1 %350, %v188_v16  }
  0x61   :  { %v134_v41 = vpop.permute.xlu2 %133 }
  0x69   :  { %v129_v43 = vpop.permute.xlu2 %128 }
  0x71   :  { %v193_v63 = vpop.permute.xlu2 %192 }
  0x75   :  { %v56_v18 = vpop.permute.xlu0 %55 }
  0x76   :  { %v46_v20 = vpop.permute.xlu1 %45 }
  0x7d   :  { %v51_v22 = vpop.permute.xlu0 %50 }
  0x7e   :  { %v41_v30 = vpop.permute.xlu1 %40 }
  0x85   :  { %v124_v47 = vpop.permute.xlu0 %123 }
  0x86   :  { %v119_v51 = vpop.permute.xlu1 %118 }
  0x87   :  { %v92_v26 = vpop.f32.mrf.mxu0 }
  0x88   :  { %v93_v32 = vadd.f32 %v92_v26, %v41_v30 }
  0x8a   :  { %v104_v34 = vmax.f32 %v93_v32, 0.0 }
  0x8c   :  { %v95_v17 = vpop.f32.mrf.mxu3 }
  0x8d   :  { %v96_v27 = vadd.f32 %v95_v17, %v46_v20  ;;  %v203_v15 = vpop.permute.xlu0 %202 }
  0x8e   :  { %v198_v9 = vpop.permute.xlu1 %197 }
  0x8f   :  { %v105_v33 = vmax.f32 %v96_v27, 0.0 }
  0x94   :  { %v98_v19 = vpop.f32.mrf.mxu3 }
  0x95   :  { %v99_v24 = vadd.f32 %v98_v19, %v51_v22  ;;  %v256_v19 = vmul.f32 %v353_v62, %v255_v14 }
  0x97   :  { %v106_v31 = vmax.f32 %v99_v24, 0.0  ;;  %v257_v24 = vmul.f32 %v256_v19, %v250_v61 }
  0x99   :  { %v259_v32 = vsel %vm258_vm3, %v250_v61, %v257_v24 }
  0x9c   :  { %v101_v23 = vpop.f32.mrf.mxu3 }
  0x9d   :  { %v102_v25 = vadd.f32 %v101_v23, %v56_v18 }
  0x9f   :  { %v107_v28 = vmax.f32 %v102_v25, 0.0 }
  0xa1   :  { %330 = vmatpush.msk.msrb.mxu0 %vm71_vm0, %v107_v28  ;;  %344 = vmatpush.msk.msra.mxu1 %vm71_vm0, %v107_v28 }
  0xa3   :  { %164 = vmatpush.msrb.mxu0 %v106_v31  ;;  %345 = vmatpush.msra.mxu1 %v106_v31 }
  0xa5   :  { %165 = vmatpush.msrb.mxu0 %v105_v33  ;;  %346 = vmatpush.msra.mxu1 %v105_v33 }
  0xa7   :  { %166 = vmatpush.msrb.mxu0 %v104_v34  ;;  %347 = vmatpush.msra.mxu1 %v104_v34 }
  0xa8   :  { %331 = vmatmul.msk.f32.vlgmr.msrb.gmra.mxu0 %vm58_vm1, %v108_v35  ;;  %332 = vmatmul.msk.f32.vlgmr.msra.gmra.mxu1 %vm58_vm1, %v109_v36  ;;  %v262_v36 = vsel %vm260_vm4, %v261_v29, %v259_v32 }
  0xb0   :  { %333 = vmatmul.msk.f32.gmra.mxu1 %vm58_vm1, %v110_v38 }
  0xb8   :  { %334 = vmatmul.msk.f32.gmra.mxu1 %vm58_vm1, %v111_v39 }
 0x125   :  { %v171_v40 = vpop.f32.mrf.mxu1  ;;  %v168_v48 = vpop.f32.mrf.mxu0 }
 0x126   :  { %v172_v49 = vadd.f32 %v171_v40, %v124_v47  ;;  %v169_v52 = vadd.f32 %v168_v48, %v119_v51 }
 0x128   :  { %v181_v54 = vmax.f32 %v172_v49, 0.0  ;;  %v180_v55 = vmax.f32 %v169_v52, 0.0 }
 0x12d   :  { %v174_v42 = vpop.f32.mrf.mxu1 }
 0x12e   :  { %v175_v45 = vadd.f32 %v174_v42, %v129_v43 }
 0x130   :  { %v182_v53 = vmax.f32 %v175_v45, 0.0 }
 0x135   :  { %v177_v44 = vpop.f32.mrf.mxu1 }
 0x136   :  { %v178_v46 = vadd.f32 %v177_v44, %v134_v41 }
 0x138   :  { %v183_v50 = vmax.f32 %v178_v46, 0.0 }
 0x13a   :  { %335 = vmatpush.msk.msra.mxu2 %vm71_vm0, %v183_v50 }
 0x13c   :  { %230 = vmatpush.msra.mxu2 %v182_v53 }
 0x13e   :  { %231 = vmatpush.msra.mxu2 %v181_v54 }
 0x140   :  { %232 = vmatpush.msra.mxu2 %v180_v55 }
 0x141   :  { %336 = vmatmul.msk.f32.vlgmr.msra.gmra.mxu2 %vm58_vm1, %v184_v56 }
 0x149   :  { %337 = vmatmul.msk.f32.gmra.mxu2 %vm58_vm1, %v185_v57 }
 0x151   :  { %338 = vmatmul.msk.f32.gmra.mxu2 %vm58_vm1, %v186_v58 }
 0x1c4   :  { %v234_v0 = vpop.f32.mrf.mxu2 }
 0x1c5   :  { %v235_v1 = vadd.f32 %v234_v0, %v193_v63 }
 0x1c7   :  { %v243_v4 = vmax.f32 %v235_v1, 0.0 }
 0x1c9   :  { %v263_v5 = vmul.f32 %v243_v4, %v243_v4  ;;  %316 = vst.msk [vmem:[%s523_s7] sm:$0xff] %vm315_vm2, %v243_v4  ;;  %v298_v26 = vmul.f32 2.0, %v243_v4  ;;  %v307_v47 = vrot.slane %v243_v4, 4 }
 0x1cb   :  { %v265_v8 = vrot.slane %v263_v5, 1 }
 0x1cc   :  { %v237_v6 = vpop.f32.mrf.mxu2 }
 0x1cd   :  { %v267_v10 = vadd.f32 %v265_v8, %v263_v5  ;;  %v238_v11 = vadd.f32 %v237_v6, %v198_v9 }
 0x1cf   :  { %354 = vrsqrt.f32 %v267_v10  ;;  %v244_v13 = vmax.f32 %v238_v11, 0.0  ;;  %vm275_vm5 = vcmp.eq.f32.partialorder %v267_v10, inf  ;;  %v278_v37 = vand.u32 2147483648, %v267_v10 }
 0x1d0   :  { %vm277_vm7 = vcmp.eq.f32.partialorder %v267_v10, 0.0 }
 0x1d1   :  { %317 = vst.msk [vmem:[%s523_s7 + $0x8] sm:$0xff] %vm315_vm2, %v244_v13  ;;  %v284_v48 = vrot.slane %v244_v13, 1 }
 0x1d3   :  { %vm286_vm10 = vcmp.le.f32.partialorder %v244_v13, %v284_v48 }
 0x1d4   :  { %v240_v16 = vpop.f32.mrf.mxu2 }
 0x1d5   :  { %v355_v17 = vpop.eup %354  ;;  %v241_v18 = vadd.f32 %v240_v16, %v203_v15 }
 0x1d6   :  { %v269_v20 = vmul.f32 %v355_v17, %v267_v10 }
 0x1d7   :  { %v245_v21 = vmax.f32 %v241_v18, 0.0 }
 0x1d8   :  { %v270_v22 = vmul.f32 %v355_v17, %v269_v20 }
 0x1d9   :  { %v288_v23 = vrot.slane %v245_v21, 7  ;;  %318 = vst.msk [vmem:[%s523_s7 + $0x10] sm:$0xff] %vm315_vm2, %v245_v21  ;;  %v291_v30 = vrot.slane %v245_v21, 1 }
 0x1da   :  { %v271_v25 = vmul.f32 0.5, %v270_v22 }
 0x1db   :  { %v290_v27 = vmin.f32 %v244_v13, %v288_v23  ;;  %vm293_vm6 = vcmp.le.f32.partialorder %v245_v21, %v291_v30 }
 0x1dc   :  { %v272_v28 = vsub.f32 1.5, %v271_v25  ;;  %v294_v41 = vsel %vm293_vm6, 1, %v356_v2 }
 0x1dd   :  { %v299_v31 = vsub.f32 %v290_v27, %v298_v26  ;;  %v295_v44 = vrot.slane %v294_v41, 7 }
 0x1de   :  { %v273_v33 = vmul.f32 %v355_v17, %v272_v28 }
 0x1df   :  { %v339_v35 = vadd.f32 -0.2, %v299_v31  ;;  %vm296_vm9 = vcmp.ne.s32.totalorder %v295_v44, 0 }
 0x1e0   :  { %v274_v34 = vmul.f32 %v273_v33, %v267_v10  ;;  %vm297_vm12 = vmor %vm286_vm10, %vm296_vm9 }
 0x1e1   :  { %v301_v42 = vmul.f32 0.5, %v339_v35 }
 0x1e2   :  { %v276_v38 = vsel %vm275_vm5, %v267_v10, %v274_v34 }
 0x1e3   :  { %v279_v39 = vsel %vm277_vm7, %v278_v37, %v276_v38  ;;  %v303_v46 = vrot.slane %v301_v42, 4 }
 0x1e4   :  { %v280_v40 = vsub.f32 %v279_v39, %v262_v36  ;;  %vm309_vm8 = vcmp.lt.f32.partialorder %v279_v39, %v307_v47 }
 0x1e6   :  { %v281_v43 = vsub.f32 0.0, %v280_v40 }
 0x1e8   :  { %v282_v45 = vmul.f32 0.1, %v281_v43 }
 0x1ea   :  { %v305_v49 = vadd.f32 %v303_v46, %v282_v45 }
 0x1ec   :  { %v310_v50 = vsel %vm309_vm8, 1.0, %v305_v49 }
 0x1ed   :  { %v312_v51 = vrot.slane %v310_v50, 4 }
 0x1ef   :  { %v314_v52 = vsel %vm297_vm12, -0.25, %v312_v51 }
 0x1f0   :  { %320 = vst.msk [vmem:[%s523_s7 + $0x11] sm:$0x10] %vm319_vm11, %v314_v52 }

</bundles_post_ra>
